<compile_context>
chip_gen: v7x
topology: tpu7x:2x2x1
jax: 0.10.0
libtpu: 0.0.40
codegen_flags: <defaults>
</compile_context>

<pallas_src>
import jax
import jax.numpy as jnp
from jax.experimental import pallas as pl
from jax.experimental.pallas import tpu as pltpu


# ----------------------- buffer setup (plain JAX, __init__) -------------------

def get_natural_sawtooth_wave(times: jnp.ndarray, periods: jnp.ndarray) -> jnp.ndarray:
    """JAX port of the numpy reference (used only for one-time buffer setup)."""
    times = times[..., None].astype(jnp.float32)          # (N, 1)
    periods = periods[None, ...].astype(jnp.float32)      # (1, M)
    slopes = 2.0 / periods
    result = slopes * jnp.mod(times, periods) - 1.0
    minimums = jnp.zeros_like(slopes) - 1.0
    maximums = slopes * (periods - 1.0) - 1.0
    result = (result - minimums) / (maximums - minimums) * 2.0 - 1.0
    return result                                         # (N, M)


def get_positional_embeddings(sequence_length: int, embedding_dimension: int) -> jnp.ndarray:
    times = jnp.arange(1, sequence_length + 1)
    periods = jnp.arange(2, embedding_dimension + 2)
    return get_natural_sawtooth_wave(times, periods)      # (S, D) float32


# ------------------------------ Pallas kernel --------------------------------

def _add_pos_kernel(emb_ref, pos_ref, out_ref):
    # Blocks are (TILE_R, W); the batch dim of emb/out is squeezed by the
    # BlockSpec.  Upcast-add-downcast keeps f32 add precision for bf16
    # embeddings (parity with PyTorch's f32 buffer promotion); the extra casts
    # ride in VPU slack of this HBM-bound kernel.
    out_ref[...] = (emb_ref[...].astype(jnp.float32)
                    + pos_ref[...].astype(jnp.float32)).astype(out_ref.dtype)


# ------------------------------ tiling helpers --------------------------------

def _sublane_multiple(dtype) -> int:
    # Packed dtypes occupy 16/32 sublanes per vreg.
    return {1: 32, 2: 16, 4: 8}.get(jnp.dtype(dtype).itemsize, 8)


def _generation_budget():
    """(target block bytes, vmem_limit cap) sized per TPU generation."""
    target, vmem_cap = 8 << 20, 56 << 20           # safe for v7x's 64 MiB VMEM
    try:
        phys = int(getattr(pltpu.get_tpu_info(), "vmem_capacity_bytes", 0))
        if phys >= (100 << 20):                    # v5e / v6e: 128 MiB physical
            target, vmem_cap = 16 << 20, 100 << 20
    except Exception:
        pass
    return target, vmem_cap


def _round_down(x: int, m: int) -> int:
    return (x // m) * m


def _round_up(x: int, m: int) -> int:
    return ((x + m - 1) // m) * m


def _pick_lane_view(flat: int, sub: int, elem_bytes: int, target_bytes: int):
    """Lane-dense (rows, width) view of a length-`flat` plane: width a multiple
    of 128 dividing `flat`, preferring rows = flat // width to be a multiple of
    the sublane packing `sub` (full-vreg load/store path)."""
    cap = max(128, _round_down(target_bytes // (sub * elem_bytes), 128))
    fallback = None
    w = _round_down(min(flat, cap), 128)
    while w >= 128:
        if flat % w == 0:
            r = flat // w
            if r % sub == 0:
                return r, w
            if fallback is None:
                fallback = (r, w)
        w -= 128
    return fallback   # always set: flat % 128 == 0 guarantees w == 128 divides


def _pick_tile_rows(rows: int, row_bytes: int, sub: int, target_bytes: int) -> int:
    """Row tile: full extent if it fits the budget, else the largest multiple of
    `sub` that fits (partial last block handled by a cdiv grid)."""
    if rows * row_bytes <= target_bytes:
        return rows
    t = _round_down(target_bytes // max(row_bytes, 1), sub)
    t = max(sub, min(t, _round_down(rows, sub)))
    return min(t, rows)


# --------------------------------- wrapper ------------------------------------

def sawtooth_positional_encoder(embeddings: jnp.ndarray,
                                pos_encodings: jnp.ndarray,
                                *,
                                target_block_bytes: int | None = None,
                                donate_embeddings: bool = False) -> jnp.ndarray:
    """Forward pass: out[b, s, d] = embeddings[b, s, d] + pos_encodings[s, d].

    embeddings: (B, S, D); pos_encodings: (max_S, D) float32 buffer.
    """
    B, S, D = embeddings.shape
    max_S, D_buf = pos_encodings.shape
    if S > max_S:
        raise ValueError(f"sequence_length {S} exceeds max_sequence_length {max_S}")
    if D != D_buf:
        raise ValueError(f"embedding_dimension mismatch: {D} vs buffer {D_buf}")

    itemsize = embeddings.dtype.itemsize
    pos_itemsize = pos_encodings.dtype.itemsize
    elem_bytes = max(itemsize, pos_itemsize)
    sub = _sublane_multiple(embeddings.dtype)

    gen_target, vmem_cap = _generation_budget()
    target = int(target_block_bytes) if target_block_bytes else gen_target

    flat = S * D
    # ---- choose a lane-dense (rows, width) view of the (S, D) plane ----------
    if D % 128 == 0:
        # Already lane-dense: no reshape and (crucially) no per-call slice/cast
        # pre-pass -- the BlockSpec index_map reads the first S rows of the full
        # f32 buffer directly.
        rows, width = S, D
        emb_view = embeddings
        pos_view = pos_encodings if (S % 8 == 0 or S == max_S) else pos_encodings[:S]
    elif flat % 128 == 0:
        # Flatten to a lane-dense view so stores are unmasked vst; prefer rows a
        # multiple of the sublane packing.  (The pos reshape depends on S, so a
        # small S*D-sized slice+reshape pre-pass remains on this path only.)
        rows, width = _pick_lane_view(flat, sub, elem_bytes, target)
        emb_view = embeddings.reshape(B, rows, width)
        pos_view = pos_encodings[:S].reshape(rows, width)
    else:
        # TODO(synk): S*D not a multiple of 128 -> lane-sparse full-D fallback;
        # the lane-dense bulk + <128-element XLA tail split was not applied to
        # avoid an extra full-output copy for these rare tiny shapes.
        rows, width = S, D
        emb_view = embeddings
        pos_view = pos_encodings if (S % 8 == 0 or S == max_S) else pos_encodings[:S]

    row_bytes = width * elem_bytes
    tile_r = _pick_tile_rows(rows, row_bytes, sub, target)
    n_r = pl.cdiv(rows, tile_r)

    # Guarantee >= 2 grid steps for tiny inputs so both of v7x's TensorCores
    # contribute HBM bandwidth (near-free one extra step on single-TC v5e/v6e).
    if n_r == 1 and B == 1 and rows >= 2 * sub:
        tile_r = _round_up(pl.cdiv(rows, 2), sub)
        n_r = pl.cdiv(rows, tile_r)

    # VMEM budget: 2x emb-in + 2x out double buffers + pos (single-buffered, or
    # double-buffered on the fallback path) + headroom.  Bounded by generation.
    blk = tile_r * width * itemsize
    pos_blk = tile_r * width * pos_itemsize
    vmem_limit = int(min(max(4 * blk + 2 * pos_blk + (2 << 20), 32 << 20), vmem_cap))

    cost = pl.CostEstimate(
        flops=B * S * D,
        transcendentals=0,
        bytes_accessed=2 * B * S * D * itemsize + S * D * pos_itemsize,
    )
    alias = {0: 0} if donate_embeddings else {}

    def run(single_buffer_pos: bool):
        pos_kwargs = {}
        if single_buffer_pos:
            # The shared pos block index only changes once per B inner steps, so
            # single-buffering it frees a full block of VMEM for bigger tiles.
            pos_kwargs["pipeline_mode"] = pl.Buffered(1)
        return pl.pallas_call(
            _add_pos_kernel,
            out_shape=jax.ShapeDtypeStruct((B, rows, width), embeddings.dtype),
            grid_spec=pltpu.PrefetchScalarGridSpec(
                num_scalar_prefetch=0,
                # Batch innermost: pos is DMA'd ~once per row tile, not B times.
                grid=(n_r, B),
                in_specs=[
                    pl.BlockSpec((None, tile_r, width), lambda r, b: (b, r, 0)),
                    pl.BlockSpec((tile_r, width), lambda r, b: (r, 0), **pos_kwargs),
                ],
                out_specs=pl.BlockSpec((None, tile_r, width), lambda r, b: (b, r, 0)),
            ),
            compiler_params=pltpu.CompilerParams(
                dimension_semantics=("parallel", "parallel"),
                vmem_limit_bytes=vmem_limit,
            ),
            cost_estimate=cost,
            input_output_aliases=alias,
        )(emb_view, pos_view)

    try:
        out_view = run(single_buffer_pos=True)
    except Exception:
        # pl.Buffered(1) unsupported on this jax/libtpu -> default double buffer.
        out_view = run(single_buffer_pos=False)

    return out_view.reshape(B, S, D)


# --------------------------------- main ----------------------------------------

def _reference(embeddings, pos_encodings):
    S = embeddings.shape[1]
    pos = pos_encodings[:S][None, :, :].astype(jnp.float32)
    return (embeddings.astype(jnp.float32) + pos).astype(embeddings.dtype)


if __name__ == "__main__":
    key = jax.random.PRNGKey(0)
    k1, k2, k3, k4, k5 = jax.random.split(key, 5)

    # 1) Module-sized demo (flattened lane-dense path, D % 128 != 0).
    batch, seq_len, embed_dim, max_seq_len = 2, 8, 32, 16
    pos_enc = get_positional_embeddings(max_seq_len, embed_dim)
    emb = jax.random.normal(k1, (batch, seq_len, embed_dim), dtype=jnp.float32)
    out = jax.block_until_ready(sawtooth_positional_encoder(emb, pos_enc))
    assert out.shape == (batch, seq_len, embed_dim)
    assert jnp.allclose(out, _reference(emb, pos_enc), atol=1e-6, rtol=1e-6), \
        "mismatch (flattened lane-dense path)"

    # 2) Lane-aligned path (D % 128 == 0): full f32 pos buffer, no pre-pass.
    pos_enc2 = get_positional_embeddings(64, 256)
    emb2 = jax.random.normal(k2, (2, 64, 256), dtype=jnp.float32)
    out2 = jax.block_until_ready(sawtooth_positional_encoder(emb2, pos_enc2))
    assert jnp.allclose(out2, _reference(emb2, pos_enc2), atol=1e-6, rtol=1e-6), \
        "mismatch (aligned path)"

    # 3) Tiny block budget: exercises row tiling, cdiv grid and pos reuse.
    out3 = jax.block_until_ready(
        sawtooth_positional_encoder(emb2, pos_enc2, target_block_bytes=32 * 1024))
    assert jnp.allclose(out3, _reference(emb2, pos_enc2), atol=1e-6, rtol=1e-6), \
        "mismatch (tiled path)"

    # 4) bf16 embeddings: f32 add inside the kernel (PyTorch f32-buffer parity).
    emb4 = jax.random.normal(k3, (2, 64, 256), dtype=jnp.bfloat16)
    out4 = jax.block_until_ready(sawtooth_positional_encoder(emb4, pos_enc2))
    assert out4.dtype == jnp.bfloat16
    assert jnp.allclose(out4.astype(jnp.float32),
                        _reference(emb4, pos_enc2).astype(jnp.float32),
                        atol=1e-2, rtol=1e-2), "mismatch (bf16 path)"

    # 5) B == 1 with max_S > S: no pos pre-pass, and the single row tile is
    #    split into 2 grid steps for v7x's two TensorCores.
    pos_enc5 = get_positional_embeddings(64, 128)
    emb5 = jax.random.normal(k4, (1, 48, 128), dtype=jnp.float32)
    out5 = jax.block_until_ready(sawtooth_positional_encoder(emb5, pos_enc5))
    assert jnp.allclose(out5, _reference(emb5, pos_enc5), atol=1e-6, rtol=1e-6), \
        "mismatch (split-grid path)"

    # 6) Odd shapes (S*D % 128 != 0): lane-sparse full-D fallback.
    pos_enc6 = get_positional_embeddings(10, 33)
    emb6 = jax.random.normal(k5, (2, 7, 33), dtype=jnp.float32)
    out6 = jax.block_until_ready(sawtooth_positional_encoder(emb6, pos_enc6))
    assert jnp.allclose(out6, _reference(emb6, pos_enc6), atol=1e-6, rtol=1e-6), \
        "mismatch (fallback path)"

    print("KERNEL_OK")
</pallas_src>

<mosaic_0001>
module attributes {stable_mosaic.version = 11 : i64} {
  func.func @_add_pos_kernel(%arg0: i32, %arg1: i32, %arg2: memref<1x1x256xf32, #tpu.memory_space<vmem>>, %arg3: memref<1x256xf32, #tpu.memory_space<vmem>>, %arg4: memref<1x1x256xf32, #tpu.memory_space<vmem>>) attributes {dimension_semantics = [#tpu.dimension_semantics<parallel>, #tpu.dimension_semantics<parallel>], iteration_bounds = array<i64: 1, 2>, scalar_prefetch = 0 : i64, scratch_operands = 0 : i64, tpu.core_type = #tpu.core_type<tc>, window_params = [{transform_indices = @transform_0, window_bounds = array<i64: 1, 1, 256>}, {pipeline_mode = #tpu.pipeline_mode<synchronous>, transform_indices = @transform_1, window_bounds = array<i64: 1, 256>}, {transform_indices = @transform_2, window_bounds = array<i64: 1, 1, 256>}]} {
    %c0 = arith.constant 0 : index
    %c0_0 = arith.constant 0 : index
    %c0_1 = arith.constant 0 : index
    %0 = vector.load %arg2[%c0, %c0_0, %c0_1] : memref<1x1x256xf32, #tpu.memory_space<vmem>>, vector<1x1x256xf32>
    %1 = vector.shape_cast %0 : vector<1x1x256xf32> to vector<1x256xf32>
    %c0_2 = arith.constant 0 : index
    %c0_3 = arith.constant 0 : index
    %2 = vector.load %arg3[%c0_2, %c0_3] : memref<1x256xf32, #tpu.memory_space<vmem>>, vector<1x256xf32>
    %3 = arith.addf %1, %2 : vector<1x256xf32>
    %c0_4 = arith.constant 0 : index
    %c0_5 = arith.constant 0 : index
    %c0_6 = arith.constant 0 : index
    %4 = vector.load %arg4[%c0_4, %c0_5, %c0_6] : memref<1x1x256xf32, #tpu.memory_space<vmem>>, vector<1x1x256xf32>
    %5 = vector.shape_cast %4 : vector<1x1x256xf32> to vector<1x256xf32>
    %6 = vector.shape_cast %3 : vector<1x256xf32> to vector<1x1x256xf32>
    tpu.vector_store %arg4[%c0_4, %c0_5, %c0_6], %6 {strides = array<i32>} : memref<1x1x256xf32, #tpu.memory_space<vmem>>, vector<1x1x256xf32>,
    return
  }
  func.func @transform_0(%arg0: i32, %arg1: i32) -> (i32, i32, i32) {
    %c0_i32 = arith.constant 0 : i32
    %c0_i32_0 = arith.constant 0 : i32
    return %arg1, %arg0, %c0_i32 : i32, i32, i32
  }
  func.func @transform_1(%arg0: i32, %arg1: i32) -> (i32, i32) {
    %c0_i32 = arith.constant 0 : i32
    %c0_i32_0 = arith.constant 0 : i32
    return %arg0, %c0_i32 : i32, i32
  }
  func.func @transform_2(%arg0: i32, %arg1: i32) -> (i32, i32, i32) {
    %c0_i32 = arith.constant 0 : i32
    %c0_i32_0 = arith.constant 0 : i32
    return %arg1, %arg0, %c0_i32 : i32, i32, i32
  }
}

module attributes {stable_mosaic.version = 11 : i64} {
  func.func @_add_pos_kernel(%arg0: i32, %arg1: i32, %arg2: memref<1x1x256xf32, #tpu.memory_space<vmem>>, %arg3: memref<1x256xf32, #tpu.memory_space<vmem>>, %arg4: memref<1x1x256xf32, #tpu.memory_space<vmem>>) attributes {dimension_semantics = [#tpu.dimension_semantics<parallel>, #tpu.dimension_semantics<parallel>], iteration_bounds = array<i64: 1, 2>, scalar_prefetch = 0 : i64, scratch_operands = 0 : i64, tpu.core_type = #tpu.core_type<tc>, window_params = [{transform_indices = @transform_0, window_bounds = array<i64: 1, 1, 256>}, {transform_indices = @transform_1, window_bounds = array<i64: 1, 256>}, {transform_indices = @transform_2, window_bounds = array<i64: 1, 1, 256>}]} {
    %c0 = arith.constant 0 : index
    %c0_0 = arith.constant 0 : index
    %c0_1 = arith.constant 0 : index
    %0 = vector.load %arg2[%c0, %c0_0, %c0_1] : memref<1x1x256xf32, #tpu.memory_space<vmem>>, vector<1x1x256xf32>
    %1 = vector.shape_cast %0 : vector<1x1x256xf32> to vector<1x256xf32>
    %c0_2 = arith.constant 0 : index
    %c0_3 = arith.constant 0 : index
    %2 = vector.load %arg3[%c0_2, %c0_3] : memref<1x256xf32, #tpu.memory_space<vmem>>, vector<1x256xf32>
    %3 = arith.addf %1, %2 : vector<1x256xf32>
    %c0_4 = arith.constant 0 : index
    %c0_5 = arith.constant 0 : index
    %c0_6 = arith.constant 0 : index
    %4 = vector.load %arg4[%c0_4, %c0_5, %c0_6] : memref<1x1x256xf32, #tpu.memory_space<vmem>>, vector<1x1x256xf32>
    %5 = vector.shape_cast %4 : vector<1x1x256xf32> to vector<1x256xf32>
    %6 = vector.shape_cast %3 : vector<1x256xf32> to vector<1x1x256xf32>
    tpu.vector_store %arg4[%c0_4, %c0_5, %c0_6], %6 {strides = array<i32>} : memref<1x1x256xf32, #tpu.memory_space<vmem>>, vector<1x1x256xf32>,
    return
  }
  func.func @transform_0(%arg0: i32, %arg1: i32) -> (i32, i32, i32) {
    %c0_i32 = arith.constant 0 : i32
    %c0_i32_0 = arith.constant 0 : i32
    return %arg1, %arg0, %c0_i32 : i32, i32, i32
  }
  func.func @transform_1(%arg0: i32, %arg1: i32) -> (i32, i32) {
    %c0_i32 = arith.constant 0 : i32
    %c0_i32_0 = arith.constant 0 : i32
    return %arg0, %c0_i32 : i32, i32
  }
  func.func @transform_2(%arg0: i32, %arg1: i32) -> (i32, i32, i32) {
    %c0_i32 = arith.constant 0 : i32
    %c0_i32_0 = arith.constant 0 : i32
    return %arg1, %arg0, %c0_i32 : i32, i32, i32
  }
}

</mosaic_0001>

<bundles_post_ra>
// kernel: tpu_custom_call.1
= control target key start
LH: loop header
LB: loop body
LE: loop exit
PB: predicated region body
PF: predicated region fallthrough
CT: control target
= control target key end

     0   :  { %7 = vsyncpa [#allocation3], 0  ;;  %s705_s0 = inlined_call_operand.hbm [shape: f32[2,1,256], index: 0, kind: input, shape index: {}]   ;;  %s706_s1 = inlined_call_operand.vmem [shape: f32[1,256], index: 1, kind: input, shape index: {}]   ;;  %s707_s2 = inlined_call_operand.hbm [shape: f32[2,1,256], index: 2, kind: output, shape index: {}]  }
   0x1   :  { %9 = vsyncpa [#allocation3 + $0x1], 0 }
   0x2   :  { %10 = vsyncpa [#allocation4], 0 }
   0x3   :  { %12 = vsyncpa [#allocation4 + $0x1], 0  ;;  %s530_s9 = smov 0   ;;  %s532_s10 = smov 0  }
   0x4   :  { %s534_s11 = smov 0   ;;  %s536_s12 = smov 0  }
   0x5   :  { %s538_s13 = smov 0   ;;  %s540_s14 = smov 0  }
   0x6 LB: > { %s319_s15 = sadd.s32 4294967295, %s511_s14   ;;  %s320_s16 = sadd.s32 4294967294, %s511_s14   ;;  %s511_s14 = sphi %s540_s14, %s18_s14   ;;  %s507_s13 = sphi %s538_s13, %s723_s13   ;;  %s503_s12 = sphi %s536_s12, %s722_s12   ;;  %s499_s11 = sphi %s534_s11, %s721_s11   ;;  %s495_s10 = sphi %s532_s10, %s720_s10   ;;  %s491_s9 = sphi %s530_s9, %s719_s9  }
   0x7   : > { %s27_s17 = sadd.s32 1, %s507_s13  ;;  %s39_s18 = sadd.s32 1, %s499_s11 }
   0x8   : > { %p28_p0 = scmp.ge.s32.totalorder %s27_s17, 2  ;;  %p46_p1 = scmp.ne.s32.totalorder %s499_s11, %s495_s10 }
   0x9   : > { %p47_p2 = scmp.eq.s32.totalorder %s511_s14, 0  ;;  %p52_p3 = scmp.ne.s32.totalorder %s495_s10, %s491_s9 }
   0xa   : > { %s725_s17 = smov (%p28_p0, %s27_s17), 0  ;;  %p53_p5 = scmp.eq.s32.totalorder %s319_s15, 0 }
   0xb   : > { %p571_p4 = por %p47_p2, %p46_p1  ;;  %s34_s20 = ssub.s32 %s507_s13, %s725_s17 }
   0xc   : > { %p104_p6 = scmp.eq.s32.totalorder %s319_s15, 1  ;;  %p37_p7 = scmp.eq.s32.totalorder %s34_s20, 0 }
   0xd   : > { %p577_p8 = por %p53_p5, %p52_p3  ;;  %p110_p10 = scmp.eq.s32.totalorder %s320_s16, 1 }
   0xe   : > { %p581_p9 = por %p104_p6, %p46_p1  ;;  %p349_p13 = scmp.lt.s32.totalorder %s511_s14, 2 }
   0xf   : > { %s586_s23 = scalar_select %p37_p7, %s499_s11, %s39_s18  }
  0x10   : > { %s711_s22 = scalar_select %p581_p9, 1, 0 }
  0x11   : > { %p588_p11 = por %p110_p10, %p52_p3  ;;  %s137_s25 = sand.u32 1, %s499_s11  }
  0x12   : > { %s324_s26 = sshll.u32 %s137_s25, 1  ;;  %s335_s27 = sshll.u32 %s507_s13, 5 }
  0x13   : > { %s712_s24 = scalar_select %p588_p11, 1, 0 }
  0x14   : > { %s599_s30 = scalar_lea.hbm %s705_s0, %s335_s27  ;;  %s141_s3 = scalar_lea.vmem [#allocation2], %s324_s26 }
  0x15   : > { %s151_s4 = sshll.u32 %s141_s3, 4  ;;  %p605_p0 = pnand %p349_p13, %p571_p4  ;;  %s601_s4 = int_to_ptr.vmem [resolvable:$true] %s151_s4 }
  0x16   : > { %s138_s6 = scalar_lea.sflag [#allocation3], %s137_s25  ;;  %s399_s7 = scalar_lea.hbm %s599_s30, 32 }
  0x17   : > { %p400_p3 = scmp.ne.s32.totalorder %s599_s30, %s399_s7  ;;  %p401_p5 = pneg %p605_p0 }
  0x18   : > { %s404_s16 = scalar_lea.hbm %s705_s0, 64  ;;  %p405_p4 = scmp.lt.u32.totalorder %s599_s30, %s705_s0 }
  0x19   : > { %p402_p6 = pnand %p401_p5, %p400_p3  ;;  %p406_p10 = scmp.lt.u32.totalorder %s404_s16, %s399_s7 }
  0x1a   : > { %p408_p12 = scmp.lt.u32.totalorder %s399_s7, %s599_s30 }
  0x1b   : > { %p403_p7 = pneg %p402_p6  ;;  %p407_p13 = por %p406_p10, %p405_p4 }
  0x1d   : > { %p409_p1 = por %p408_p12, %p407_p13 }
  0x1f   : > { %p410_p2 = pnand %p409_p1, %p403_p7 }
  0x21   : > { %413 = shalt.err (!%p410_p2)
}
  0x22   : > { %s414_s20 = scalar_lea.vmem %s601_s4, 32  ;;  %s513_s25 = smov [#allocation2]  }
  0x23   : > { %p415_p3 = scmp.ne.s32.totalorder %s601_s4, %s414_s20  ;;  %s419_s26 = sshll.u32 %s513_s25, 4  ;;  %s420_s26 = int_to_ptr.vmem [resolvable:$false] %s419_s26 }
  0x24   : > { %s421_s27 = scalar_lea.vmem %s420_s26, 64  ;;  %p422_p9 = scmp.lt.s32.totalorder %s601_s4, %s420_s26 }
  0x25   : > { %p417_p6 = pnand %p415_p3, %p401_p5  ;;  %p423_p4 = scmp.lt.s32.totalorder %s421_s27, %s414_s20 }
  0x27   : > { %p418_p11 = pneg %p417_p6  ;;  %p424_p10 = por %p423_p4, %p422_p9 }
  0x29   : > { %p425_p12 = pnand %p424_p10, %p418_p11 }
  0x2b   : > { %428 = shalt.err (!%p425_p12)
}
  0x2c   : > { %344 = dma.hbm_to_vmem [thread:$0]  (!%p605_p0), %s599_s30, 32, %s601_s4, %s138_s6  }
  0x2d   : > { %p714_p1 = scmp.lt.s32.totalorder %s511_s14, 3  ;;  %p715_p2 = scmp.ge.s32.totalorder %s511_s14, 1 }
  0x2f   : > { %p157_p5 = pnand %p715_p2, %p714_p1 }
  0x30   : > { %s641_s28 = sand.u32 (!%p157_p5), 1, %s495_s10  }
  0x31   : > { %160 = sbr.rel (%p157_p5) target bundleno = 83 (0x53), region = 28  ;;  %s328_s29 = sshll.u32 (!%p157_p5), %s641_s28, 1 }
  0x32   : > { %s163_s3 = scalar_lea.sflag (!%p157_p5), [#allocation3], %s641_s28  ;;  %s166_s7 = scalar_lea.vmem (!%p157_p5), [#allocation2], %s328_s29 }
  0x38   : > { %482 = dma.done.wait (%p577_p8), %s163_s3, 32  }
  0x39   : > { %484 = vsyncadd (%p577_p8), %s163_s3, 4294967264  ;;  %v198_v0 = vlaneseq  ;;  %s190_s30 = scalar_lea.vmem [#allocation5], %s328_s29  ;;  %s336_s5 = sshll.u32 %s503_s12, 5  ;;  %v195_v1 = vld [vmem:[%s166_s7] sm:$0x3] }
  0x3a   : > { %s220_s4 = sshll.u32 %s190_s30, 4  ;;  %v196_v2 = vld [vmem:[%s706_s1] sm:$0x3]  ;;  %s658_s21 = scalar_lea.hbm %s707_s2, %s336_s5  ;;  %s653_s4 = int_to_ptr.vmem [resolvable:$true] %s220_s4 }
  0x3b   : > { %vm200_vm0 = vcmp.lt.s32.totalorder %v198_v0, 256  ;;  %v197_v3 = vadd.f32 %v196_v2, %v195_v1  ;;  %s204_s18 = scalar_lea.sflag [#allocation4], %s641_s28  ;;  %s429_s12 = scalar_lea.vmem %s653_s4, 32 }
  0x3c   : > { %p430_p8 = scmp.ne.s32.totalorder %s653_s4, %s429_s12  ;;  %p716_p9 = scmp.ne.s32.totalorder %s711_s22, 0 }
  0x3d   : > { %202 = vst.msk [vmem:[%s190_s30] sm:$0x3] %vm200_vm0, %v197_v3  ;;  %s514_s19 = smov [#allocation5]  }
  0x3e   : > { %p431_p11 = pnand %p430_p8, %p716_p9  ;;  %s433_s20 = sshll.u32 %s514_s19, 4  ;;  %s434_s20 = int_to_ptr.vmem [resolvable:$false] %s433_s20 }
  0x3f   : > { %s435_s25 = scalar_lea.vmem %s434_s20, 64  ;;  %p436_p7 = scmp.lt.s32.totalorder %s653_s4, %s434_s20 }
  0x40   : > { %p432_p0 = pneg %p431_p11  ;;  %p437_p13 = scmp.lt.s32.totalorder %s435_s25, %s429_s12 }
  0x42   : > { %p438_p3 = por %p437_p13, %p436_p7 }
  0x44   : > { %p439_p6 = pnand %p438_p3, %p432_p0 }
  0x46   : > { %442 = shalt.err (!%p439_p6)
}
  0x47   : > { %s443_s26 = scalar_lea.hbm %s658_s21, 32  ;;  %s447_s29 = scalar_lea.hbm %s707_s2, 64 }
  0x48   : > { %p444_p4 = scmp.ne.s32.totalorder %s658_s21, %s443_s26  ;;  %p448_p1 = scmp.lt.u32.totalorder %s658_s21, %s707_s2 }
  0x49   : > { %p449_p2 = scmp.lt.u32.totalorder %s447_s29, %s443_s26  ;;  %p451_p8 = scmp.lt.u32.totalorder %s443_s26, %s658_s21 }
  0x4a   : > { %p445_p10 = pnand %p444_p4, %p716_p9 }
  0x4b   : > { %p450_p5 = por %p449_p2, %p448_p1 }
  0x4c   : > { %p446_p12 = pneg %p445_p10 }
  0x4d   : > { %p452_p11 = por %p451_p8, %p450_p5 }
  0x4f   : > { %p453_p0 = pnand %p452_p11, %p446_p12 }
  0x51   : > { %456 = shalt.err (!%p453_p0)
}
  0x52   : > { %339 = dma.vmem_to_hbm [thread:$0]  (%p716_p9), %s653_s4, 32, %s658_s21, %s204_s18  }
  0x53 PF: > { %s232_s30 = sand.u32 1, %s491_s9   ;;  %p717_p7 = scmp.ne.s32.totalorder %s712_s24, 0 }
  0x54   : > { %p718_p13 = scmp.ge.s32.totalorder %s511_s14, 2  ;;  %s233_s5 = scalar_lea.sflag [#allocation4], %s232_s30 }
  0x56   : > { %p346_p3 = pnand %p718_p13, %p717_p7 }
  0x58   : > { %486 = dma.done.wait (!%p346_p3), %s233_s5, 32  }
  0x59   : > { %488 = vsyncadd (!%p346_p3), %s233_s5, 4294967264  ;;  %s18_s14 = sadd.s32 1, %s511_s14   ;;  %s719_s9 = smov %s495_s10 }
  0x5a   : > { %p15_p6 = scmp.ge.s32.totalorder %s18_s14, 4   ;;  %s720_s10 = smov %s499_s11 }
  0x5b   : > { %s721_s11 = smov %s586_s23  ;;  %s722_s12 = smov %s507_s13 }
  0x5c   : > { %s723_s13 = smov %s725_s17  ;;  %17 = sbr.rel (!%p15_p6) target bundleno = 6 (0x6), region = 76 }
  0x63   :  { %238 = vsyncpa [#allocation3], 1 }
  0x64   :  { %240 = vsyncpa [#allocation3 + $0x1], 1 }
  0x65   :  { %241 = vsyncpa [#allocation4], 1 }
  0x66   :  { %243 = vsyncpa [#allocation4 + $0x1], 1 }

// kernel: tpu_custom_call.1
= control target key start
LH: loop header
LB: loop body
LE: loop exit
PB: predicated region body
PF: predicated region fallthrough
CT: control target
= control target key end

     0   :  { %7 = vsyncpa [#allocation3], 0  ;;  %s705_s0 = inlined_call_operand.hbm [shape: f32[2,1,256], index: 0, kind: input, shape index: {}]   ;;  %s706_s1 = inlined_call_operand.vmem [shape: f32[1,256], index: 1, kind: input, shape index: {}]   ;;  %s707_s2 = inlined_call_operand.hbm [shape: f32[2,1,256], index: 2, kind: output, shape index: {}]  }
   0x1   :  { %9 = vsyncpa [#allocation3 + $0x1], 0 }
   0x2   :  { %10 = vsyncpa [#allocation4], 0 }
   0x3   :  { %12 = vsyncpa [#allocation4 + $0x1], 0  ;;  %s530_s9 = smov 0   ;;  %s532_s10 = smov 0  }
   0x4   :  { %s534_s11 = smov 0   ;;  %s536_s12 = smov 0  }
   0x5   :  { %s538_s13 = smov 0   ;;  %s540_s14 = smov 0  }
   0x6 LB: > { %s319_s15 = sadd.s32 4294967295, %s511_s14   ;;  %s320_s16 = sadd.s32 4294967294, %s511_s14   ;;  %s511_s14 = sphi %s540_s14, %s18_s14   ;;  %s507_s13 = sphi %s538_s13, %s723_s13   ;;  %s503_s12 = sphi %s536_s12, %s722_s12   ;;  %s499_s11 = sphi %s534_s11, %s721_s11   ;;  %s495_s10 = sphi %s532_s10, %s720_s10   ;;  %s491_s9 = sphi %s530_s9, %s719_s9  }
   0x7   : > { %s27_s17 = sadd.s32 1, %s507_s13  ;;  %s39_s18 = sadd.s32 1, %s499_s11 }
   0x8   : > { %p28_p0 = scmp.ge.s32.totalorder %s27_s17, 2  ;;  %p46_p1 = scmp.ne.s32.totalorder %s499_s11, %s495_s10 }
   0x9   : > { %p47_p2 = scmp.eq.s32.totalorder %s511_s14, 0  ;;  %p52_p3 = scmp.ne.s32.totalorder %s495_s10, %s491_s9 }
   0xa   : > { %s725_s17 = smov (%p28_p0, %s27_s17), 0  ;;  %p53_p5 = scmp.eq.s32.totalorder %s319_s15, 0 }
   0xb   : > { %p571_p4 = por %p47_p2, %p46_p1  ;;  %s34_s20 = ssub.s32 %s507_s13, %s725_s17 }
   0xc   : > { %p104_p6 = scmp.eq.s32.totalorder %s319_s15, 1  ;;  %p37_p7 = scmp.eq.s32.totalorder %s34_s20, 0 }
   0xd   : > { %p577_p8 = por %p53_p5, %p52_p3  ;;  %p110_p10 = scmp.eq.s32.totalorder %s320_s16, 1 }
   0xe   : > { %p581_p9 = por %p104_p6, %p46_p1  ;;  %p349_p13 = scmp.lt.s32.totalorder %s511_s14, 2 }
   0xf   : > { %s586_s23 = scalar_select %p37_p7, %s499_s11, %s39_s18  }
  0x10   : > { %s711_s22 = scalar_select %p581_p9, 1, 0 }
  0x11   : > { %p588_p11 = por %p110_p10, %p52_p3  ;;  %s137_s25 = sand.u32 1, %s499_s11  }
  0x12   : > { %s324_s26 = sshll.u32 %s137_s25, 1  ;;  %s335_s27 = sshll.u32 %s507_s13, 5 }
  0x13   : > { %s712_s24 = scalar_select %p588_p11, 1, 0 }
  0x14   : > { %s599_s30 = scalar_lea.hbm %s705_s0, %s335_s27  ;;  %s141_s3 = scalar_lea.vmem [#allocation2], %s324_s26 }
  0x15   : > { %s151_s4 = sshll.u32 %s141_s3, 4  ;;  %p605_p0 = pnand %p349_p13, %p571_p4  ;;  %s601_s4 = int_to_ptr.vmem [resolvable:$true] %s151_s4 }
  0x16   : > { %s138_s6 = scalar_lea.sflag [#allocation3], %s137_s25  ;;  %s399_s7 = scalar_lea.hbm %s599_s30, 32 }
  0x17   : > { %p400_p3 = scmp.ne.s32.totalorder %s599_s30, %s399_s7  ;;  %p401_p5 = pneg %p605_p0 }
  0x18   : > { %s404_s16 = scalar_lea.hbm %s705_s0, 64  ;;  %p405_p4 = scmp.lt.u32.totalorder %s599_s30, %s705_s0 }
  0x19   : > { %p402_p6 = pnand %p401_p5, %p400_p3  ;;  %p406_p10 = scmp.lt.u32.totalorder %s404_s16, %s399_s7 }
  0x1a   : > { %p408_p12 = scmp.lt.u32.totalorder %s399_s7, %s599_s30 }
  0x1b   : > { %p403_p7 = pneg %p402_p6  ;;  %p407_p13 = por %p406_p10, %p405_p4 }
  0x1d   : > { %p409_p1 = por %p408_p12, %p407_p13 }
  0x1f   : > { %p410_p2 = pnand %p409_p1, %p403_p7 }
  0x21   : > { %413 = shalt.err (!%p410_p2)
}
  0x22   : > { %s414_s20 = scalar_lea.vmem %s601_s4, 32  ;;  %s513_s25 = smov [#allocation2]  }
  0x23   : > { %p415_p3 = scmp.ne.s32.totalorder %s601_s4, %s414_s20  ;;  %s419_s26 = sshll.u32 %s513_s25, 4  ;;  %s420_s26 = int_to_ptr.vmem [resolvable:$false] %s419_s26 }
  0x24   : > { %s421_s27 = scalar_lea.vmem %s420_s26, 64  ;;  %p422_p9 = scmp.lt.s32.totalorder %s601_s4, %s420_s26 }
  0x25   : > { %p417_p6 = pnand %p415_p3, %p401_p5  ;;  %p423_p4 = scmp.lt.s32.totalorder %s421_s27, %s414_s20 }
  0x27   : > { %p418_p11 = pneg %p417_p6  ;;  %p424_p10 = por %p423_p4, %p422_p9 }
  0x29   : > { %p425_p12 = pnand %p424_p10, %p418_p11 }
  0x2b   : > { %428 = shalt.err (!%p425_p12)
}
  0x2c   : > { %344 = dma.hbm_to_vmem [thread:$0]  (!%p605_p0), %s599_s30, 32, %s601_s4, %s138_s6  }
  0x2d   : > { %p714_p1 = scmp.lt.s32.totalorder %s511_s14, 3  ;;  %p715_p2 = scmp.ge.s32.totalorder %s511_s14, 1 }
  0x2f   : > { %p157_p5 = pnand %p715_p2, %p714_p1 }
  0x30   : > { %s641_s28 = sand.u32 (!%p157_p5), 1, %s495_s10  }
  0x31   : > { %160 = sbr.rel (%p157_p5) target bundleno = 83 (0x53), region = 28  ;;  %s328_s29 = sshll.u32 (!%p157_p5), %s641_s28, 1 }
  0x32   : > { %s163_s3 = scalar_lea.sflag (!%p157_p5), [#allocation3], %s641_s28  ;;  %s166_s7 = scalar_lea.vmem (!%p157_p5), [#allocation2], %s328_s29 }
  0x38   : > { %482 = dma.done.wait (%p577_p8), %s163_s3, 32  }
  0x39   : > { %484 = vsyncadd (%p577_p8), %s163_s3, 4294967264  ;;  %v198_v0 = vlaneseq  ;;  %s190_s30 = scalar_lea.vmem [#allocation5], %s328_s29  ;;  %s336_s5 = sshll.u32 %s503_s12, 5  ;;  %v195_v1 = vld [vmem:[%s166_s7] sm:$0x3] }
  0x3a   : > { %s220_s4 = sshll.u32 %s190_s30, 4  ;;  %v196_v2 = vld [vmem:[%s706_s1] sm:$0x3]  ;;  %s658_s21 = scalar_lea.hbm %s707_s2, %s336_s5  ;;  %s653_s4 = int_to_ptr.vmem [resolvable:$true] %s220_s4 }
  0x3b   : > { %vm200_vm0 = vcmp.lt.s32.totalorder %v198_v0, 256  ;;  %v197_v3 = vadd.f32 %v196_v2, %v195_v1  ;;  %s204_s18 = scalar_lea.sflag [#allocation4], %s641_s28  ;;  %s429_s12 = scalar_lea.vmem %s653_s4, 32 }
  0x3c   : > { %p430_p8 = scmp.ne.s32.totalorder %s653_s4, %s429_s12  ;;  %p716_p9 = scmp.ne.s32.totalorder %s711_s22, 0 }
  0x3d   : > { %202 = vst.msk [vmem:[%s190_s30] sm:$0x3] %vm200_vm0, %v197_v3  ;;  %s514_s19 = smov [#allocation5]  }
  0x3e   : > { %p431_p11 = pnand %p430_p8, %p716_p9  ;;  %s433_s20 = sshll.u32 %s514_s19, 4  ;;  %s434_s20 = int_to_ptr.vmem [resolvable:$false] %s433_s20 }
  0x3f   : > { %s435_s25 = scalar_lea.vmem %s434_s20, 64  ;;  %p436_p7 = scmp.lt.s32.totalorder %s653_s4, %s434_s20 }
  0x40   : > { %p432_p0 = pneg %p431_p11  ;;  %p437_p13 = scmp.lt.s32.totalorder %s435_s25, %s429_s12 }
  0x42   : > { %p438_p3 = por %p437_p13, %p436_p7 }
  0x44   : > { %p439_p6 = pnand %p438_p3, %p432_p0 }
  0x46   : > { %442 = shalt.err (!%p439_p6)
}
  0x47   : > { %s443_s26 = scalar_lea.hbm %s658_s21, 32  ;;  %s447_s29 = scalar_lea.hbm %s707_s2, 64 }
  0x48   : > { %p444_p4 = scmp.ne.s32.totalorder %s658_s21, %s443_s26  ;;  %p448_p1 = scmp.lt.u32.totalorder %s658_s21, %s707_s2 }
  0x49   : > { %p449_p2 = scmp.lt.u32.totalorder %s447_s29, %s443_s26  ;;  %p451_p8 = scmp.lt.u32.totalorder %s443_s26, %s658_s21 }
  0x4a   : > { %p445_p10 = pnand %p444_p4, %p716_p9 }
  0x4b   : > { %p450_p5 = por %p449_p2, %p448_p1 }
  0x4c   : > { %p446_p12 = pneg %p445_p10 }
  0x4d   : > { %p452_p11 = por %p451_p8, %p450_p5 }
  0x4f   : > { %p453_p0 = pnand %p452_p11, %p446_p12 }
  0x51   : > { %456 = shalt.err (!%p453_p0)
}
  0x52   : > { %339 = dma.vmem_to_hbm [thread:$0]  (%p716_p9), %s653_s4, 32, %s658_s21, %s204_s18  }
  0x53 PF: > { %s232_s30 = sand.u32 1, %s491_s9   ;;  %p717_p7 = scmp.ne.s32.totalorder %s712_s24, 0 }
  0x54   : > { %p718_p13 = scmp.ge.s32.totalorder %s511_s14, 2  ;;  %s233_s5 = scalar_lea.sflag [#allocation4], %s232_s30 }
  0x56   : > { %p346_p3 = pnand %p718_p13, %p717_p7 }
  0x58   : > { %486 = dma.done.wait (!%p346_p3), %s233_s5, 32  }
  0x59   : > { %488 = vsyncadd (!%p346_p3), %s233_s5, 4294967264  ;;  %s18_s14 = sadd.s32 1, %s511_s14   ;;  %s719_s9 = smov %s495_s10 }
  0x5a   : > { %p15_p6 = scmp.ge.s32.totalorder %s18_s14, 4   ;;  %s720_s10 = smov %s499_s11 }
  0x5b   : > { %s721_s11 = smov %s586_s23  ;;  %s722_s12 = smov %s507_s13 }
  0x5c   : > { %s723_s13 = smov %s725_s17  ;;  %17 = sbr.rel (!%p15_p6) target bundleno = 6 (0x6), region = 76 }
  0x63   :  { %238 = vsyncpa [#allocation3], 1 }
  0x64   :  { %240 = vsyncpa [#allocation3 + $0x1], 1 }
  0x65   :  { %241 = vsyncpa [#allocation4], 1 }
  0x66   :  { %243 = vsyncpa [#allocation4 + $0x1], 1 }

</bundles_post_ra>
